<compile_context>
chip_gen: v5e
topology: v5e:2x2
jax: 0.10.0
libtpu: 0.0.40
codegen_flags: <defaults>
</compile_context>

<pallas_src>
import functools
import math

import jax
import jax.numpy as jnp
from jax.experimental import pallas as pl
from jax.experimental.pallas import tpu as pltpu


def _round_up(x, k):
    return ((x + k - 1) // k) * k


def _pad2d(a, rows, cols):
    return jnp.pad(a, ((0, rows - a.shape[0]), (0, cols - a.shape[1])))


def _fista_kernel(params_ref, y_ref, wT_ref, sT_ref, dT_ref, dmat_ref,
                  x_ref, b_ref, *, num_iter, compute_dtype):
    """One batch tile: runs the whole FISTA loop with weights resident in VMEM.

    params_ref : SMEM f32[num_iter+1]  -- [thr, mom_0, ..., mom_{num_iter-1}]
    y_ref      : VMEM f32[TB, m_pad]
    wT_ref     : VMEM cdt[m_pad, n_pad]   (W.T)
    sT_ref     : VMEM cdt[n_pad, n_pad]   (S.T)
    dT_ref     : VMEM cdt[n_pad, p_pad]   (D.T)
    dmat_ref   : VMEM cdt[p_pad, n_pad]   (D)
    x_ref      : VMEM f32[num_iter+1, TB, n_pad]  (all iterates, incl. x[0]=0)
    b_ref      : VMEM f32[TB, n_pad] scratch for the loop-invariant y @ W.T
    """
    cdt = compute_dtype
    thr = params_ref[0]
    n_lanes = x_ref.shape[-1]
    # Hoisted broadcasts (JAX does not CSE broadcast_in_dim inside the loop).
    thr_row = jnp.full((1, n_lanes), thr, jnp.float32)

    # Loop-invariant b = y @ W.T, kept in VMEM scratch (not an SSA carry).
    b_ref[...] = jnp.dot(y_ref[...].astype(cdt), wT_ref[...],
                         preferred_element_type=jnp.float32)
    # x[0] = d = 0
    x_ref[0] = jnp.zeros(x_ref.shape[1:], x_ref.dtype)

    def body(it, carry):
        mom = params_ref[1 + it]
        d_cur = x_ref[it]                          # current iterate
        d_prev = x_ref[jnp.maximum(it - 1, 0)]     # previous iterate (== d_cur at it=0)
        z = d_cur + mom * (d_cur - d_prev)
        u = jnp.dot(z.astype(cdt), sT_ref[...],
                    preferred_element_type=jnp.float32) + b_ref[...]
        v = jnp.dot(u.astype(cdt), dT_ref[...],
                    preferred_element_type=jnp.float32)
        # soft threshold: relu(v - thr) - relu(-v - thr)
        s = jnp.maximum(v - thr_row, 0.0) - jnp.maximum(-v - thr_row, 0.0)
        x_ref[it + 1] = jnp.dot(s.astype(cdt), dmat_ref[...],
                                preferred_element_type=jnp.float32)
        return carry

    jax.lax.fori_loop(0, num_iter, body, 0, unroll=(num_iter <= 16))


def fista_forward(y, W, S, D, thr, num_iter, *,
                  compute_dtype=jnp.bfloat16, block_batch=256,
                  lane_multiple=128):
    """Returns x_all of shape (num_iter + 1, batch, n) (the PyTorch list `x`)."""
    batch, m = y.shape
    n = S.shape[0]
    p = D.shape[0]

    # Lane-dense / MXU-friendly padding (exact: zero pads stay zero end-to-end).
    m_pad = _round_up(m, lane_multiple)
    n_pad = _round_up(n, lane_multiple)
    p_pad = _round_up(p, lane_multiple)

    # Batch tiling: TB rows per grid step (multiple of 8 sublanes).
    tb = _round_up(min(block_batch, _round_up(batch, 8)), 8)
    batch_pad = _round_up(batch, tb)
    num_blocks = batch_pad // tb

    y_pad = _pad2d(y.astype(jnp.float32), batch_pad, m_pad)
    wT = _pad2d(W.T, m_pad, n_pad).astype(compute_dtype)
    sT = _pad2d(S.T, n_pad, n_pad).astype(compute_dtype)
    dT = _pad2d(D.T, n_pad, p_pad).astype(compute_dtype)
    dmat = _pad2d(D, p_pad, n_pad).astype(compute_dtype)

    # Host-side FISTA momentum schedule + threshold -> small SMEM parameter vector.
    params = [float(thr)]
    a1 = 1.0
    for _ in range(num_iter):
        a0 = a1
        a1 = 0.5 + math.sqrt(1.0 + 4.0 * a0 ** 2) / 2.0
        params.append((a0 - 1.0) / a1)
    params = jnp.asarray(params, jnp.float32)

    # VMEM budget: resident weights + double-buffered y / x tiles + b scratch.
    wbytes = jnp.dtype(compute_dtype).itemsize
    weights_b = (m_pad * n_pad + n_pad * n_pad + 2 * n_pad * p_pad) * wbytes
    io_b = (tb * m_pad + (num_iter + 1) * tb * n_pad) * 4
    scratch_b = tb * n_pad * 4
    est = 2 * (weights_b + io_b) + scratch_b
    vmem_limit = int(min(max(1.5 * est + (16 << 20), 32 << 20), 100 << 20))

    kernel = functools.partial(_fista_kernel, num_iter=num_iter,
                               compute_dtype=compute_dtype)

    x_pad = pl.pallas_call(
        kernel,
        grid=(num_blocks,),
        in_specs=[
            pl.BlockSpec(memory_space=pltpu.MemorySpace.SMEM),   # params (thr, mom[:])
            pl.BlockSpec((tb, m_pad), lambda i: (i, 0)),         # y tile
            pl.BlockSpec((m_pad, n_pad), lambda i: (0, 0)),      # W.T (resident)
            pl.BlockSpec((n_pad, n_pad), lambda i: (0, 0)),      # S.T (resident)
            pl.BlockSpec((n_pad, p_pad), lambda i: (0, 0)),      # D.T (resident)
            pl.BlockSpec((p_pad, n_pad), lambda i: (0, 0)),      # D   (resident)
        ],
        out_specs=pl.BlockSpec((num_iter + 1, tb, n_pad), lambda i: (0, i, 0)),
        out_shape=jax.ShapeDtypeStruct((num_iter + 1, batch_pad, n_pad),
                                       jnp.float32),
        scratch_shapes=[pltpu.VMEM((tb, n_pad), jnp.float32)],
        compiler_params=pltpu.CompilerParams(
            dimension_semantics=("parallel",),
            vmem_limit_bytes=vmem_limit),
    )(params, y_pad, wT, sT, dT, dmat)

    return x_pad[:, :batch, :n]


# ---------------- pure-JAX references (validation only) ----------------

_HP = jax.lax.Precision.HIGHEST


def _fista_reference_f32(y, W, S, D, thr, num_iter):
    """Faithful f32 mirror of the PyTorch forward (column-major formulation)."""
    batch = y.shape[0]
    n = S.shape[0]
    d = jnp.zeros((batch, n), jnp.float32)
    d0 = jnp.zeros((batch, n), jnp.float32)
    xs = [d]
    a1 = 1.0
    for _ in range(num_iter):
        a0 = a1
        a1 = 0.5 + math.sqrt(1.0 + 4.0 * a0 ** 2) / 2.0
        z = d + (a0 - 1.0) / a1 * (d - d0)
        d0 = d
        u = jnp.dot(S, z.T, precision=_HP).T + jnp.dot(W, y.T, precision=_HP).T
        v = jnp.dot(D, u.T, precision=_HP)
        s = jnp.maximum(v - thr, 0.0) - jnp.maximum(-v - thr, 0.0)
        d = jnp.dot(D.T, s, precision=_HP).T
        xs.append(d)
    return jnp.stack(xs, axis=0)


def _fista_reference_quant(y, W, S, D, thr, num_iter, cdt):
    """Mirror of the kernel's mixed-precision path (cdt operands, f32 accumulate)."""
    wT, sT, dT, dm = W.T.astype(cdt), S.T.astype(cdt), D.T.astype(cdt), D.astype(cdt)
    b = jnp.dot(y.astype(cdt), wT, precision=_HP,
                preferred_element_type=jnp.float32)
    d = jnp.zeros((y.shape[0], S.shape[0]), jnp.float32)
    d0 = d
    xs = [d]
    a1 = 1.0
    for _ in range(num_iter):
        a0 = a1
        a1 = 0.5 + math.sqrt(1.0 + 4.0 * a0 ** 2) / 2.0
        z = d + (a0 - 1.0) / a1 * (d - d0)
        d0 = d
        u = jnp.dot(z.astype(cdt), sT, precision=_HP,
                    preferred_element_type=jnp.float32) + b
        v = jnp.dot(u.astype(cdt), dT, precision=_HP,
                    preferred_element_type=jnp.float32)
        s = jnp.maximum(v - thr, 0.0) - jnp.maximum(-v - thr, 0.0)
        d = jnp.dot(s.astype(cdt), dm, precision=_HP,
                    preferred_element_type=jnp.float32)
        xs.append(d)
    return jnp.stack(xs, axis=0)


if __name__ == "__main__":
    key = jax.random.PRNGKey(0)
    k_a, k_d, k_y = jax.random.split(key, 3)

    # Small synthetic problem: y in R^{batch x m}, code in R^n, dictionary D in R^{p x n}.
    batch, m, n, p = 8, 16, 32, 32
    num_iter = 5
    alpha = 10.0
    thr_in = 0.5

    A = jax.random.normal(k_a, (m, n), jnp.float32) / jnp.sqrt(m)
    Dmat = jax.random.normal(k_d, (p, n), jnp.float32) / jnp.sqrt(p)
    y = jax.random.normal(k_y, (batch, m), jnp.float32)

    # weights_init():
    S = jnp.eye(n, dtype=jnp.float32) - (1.0 / alpha) * (A.T @ A)   # (n, n)
    W = (1.0 / alpha) * A.T                                         # (n, m)
    thr = thr_in / alpha                                            # scalar

    # Fast path: bf16 operands on the MXU, f32 accumulation.
    x_fast = jax.block_until_ready(fista_forward(y, W, S, Dmat, thr, num_iter))
    assert x_fast.shape == (num_iter + 1, batch, n)
    ref_fast = _fista_reference_quant(y, W, S, Dmat, thr, num_iter, jnp.bfloat16)
    assert jnp.allclose(x_fast, ref_fast, atol=1e-3, rtol=1e-2), (
        "bf16 path mismatch, max abs err = %g"
        % float(jnp.max(jnp.abs(x_fast - ref_fast))))

    # Full-f32 path: semantically faithful to the PyTorch forward.
    x_f32 = jax.block_until_ready(
        fista_forward(y, W, S, Dmat, thr, num_iter, compute_dtype=jnp.float32))
    ref_f32 = _fista_reference_f32(y, W, S, Dmat, thr, num_iter)
    assert jnp.allclose(x_f32, ref_f32, atol=1e-4, rtol=1e-4), (
        "f32 path mismatch, max abs err = %g"
        % float(jnp.max(jnp.abs(x_f32 - ref_f32))))

    print("KERNEL_OK")
</pallas_src>

<mosaic_0001>
module attributes {stable_mosaic.version = 11 : i64} {
  func.func @_fista_kernel(%arg0: i32, %arg1: memref<6xf32, #tpu.memory_space<smem>>, %arg2: memref<8x128xf32, #tpu.memory_space<vmem>>, %arg3: memref<128x128xbf16, #tpu.memory_space<vmem>>, %arg4: memref<128x128xbf16, #tpu.memory_space<vmem>>, %arg5: memref<128x128xbf16, #tpu.memory_space<vmem>>, %arg6: memref<128x128xbf16, #tpu.memory_space<vmem>>, %arg7: memref<6x8x128xf32, #tpu.memory_space<vmem>>, %arg8: memref<8x128xf32, #tpu.memory_space<vmem>>) attributes {dimension_semantics = [#tpu.dimension_semantics<parallel>], iteration_bounds = array<i64: 1>, scalar_prefetch = 0 : i64, scratch_operands = 1 : i64, tpu.core_type = #tpu.core_type<tc>, window_params = [{transform_indices = @transform_0, window_bounds = array<i64: 6>}, {transform_indices = @transform_1, window_bounds = array<i64: 8, 128>}, {pipeline_mode = #tpu.pipeline_mode<synchronous>, transform_indices = @transform_2, window_bounds = array<i64: 128, 128>}, {pipeline_mode = #tpu.pipeline_mode<synchronous>, transform_indices = @transform_3, window_bounds = array<i64: 128, 128>}, {pipeline_mode = #tpu.pipeline_mode<synchronous>, transform_indices = @transform_4, window_bounds = array<i64: 128, 128>}, {pipeline_mode = #tpu.pipeline_mode<synchronous>, transform_indices = @transform_5, window_bounds = array<i64: 128, 128>}, {transform_indices = @transform_6, window_bounds = array<i64: 6, 8, 128>}]} {
    %c0 = arith.constant 0 : index
    %0 = memref.load %arg1[%c0] : memref<6xf32, #tpu.memory_space<smem>>
    %1 = vector.broadcast %0 : f32 to vector<1x128xf32>
    %c0_0 = arith.constant 0 : index
    %c0_1 = arith.constant 0 : index
    %2 = vector.load %arg2[%c0_0, %c0_1] : memref<8x128xf32, #tpu.memory_space<vmem>>, vector<8x128xf32>
    %3 = arith.truncf %2 : vector<8x128xf32> to vector<8x128xbf16>
    %c0_2 = arith.constant 0 : index
    %c0_3 = arith.constant 0 : index
    %4 = vector.load %arg3[%c0_2, %c0_3] : memref<128x128xbf16, #tpu.memory_space<vmem>>, vector<128x128xbf16>
    %cst = arith.constant dense<0.000000e+00> : vector<8x128xf32>
    %5 = tpu.matmul %3, %4, %cst {dimension_numbers = #tpu.dot_dimension_numbers<[1], [0], [0], [1], [0, 0, 1, 1], [], []>} : vector<8x128xbf16>, vector<128x128xbf16>, vector<8x128xf32> -> vector<8x128xf32>
    %c0_4 = arith.constant 0 : index
    %c0_5 = arith.constant 0 : index
    %6 = vector.load %arg8[%c0_4, %c0_5] : memref<8x128xf32, #tpu.memory_space<vmem>>, vector<8x128xf32>
    tpu.vector_store %arg8[%c0_4, %c0_5], %5 {strides = array<i32>} : memref<8x128xf32, #tpu.memory_space<vmem>>, vector<8x128xf32>,
    %cst_6 = arith.constant 0.000000e+00 : f32
    %7 = vector.broadcast %cst_6 : f32 to vector<8x128xf32>
    %c0_7 = arith.constant 0 : index
    %c0_8 = arith.constant 0 : index
    %c0_9 = arith.constant 0 : index
    %8 = vector.load %arg7[%c0_7, %c0_8, %c0_9] : memref<6x8x128xf32, #tpu.memory_space<vmem>>, vector<1x8x128xf32>
    %9 = vector.shape_cast %8 : vector<1x8x128xf32> to vector<8x128xf32>
    %10 = vector.shape_cast %7 : vector<8x128xf32> to vector<1x8x128xf32>
    tpu.vector_store %arg7[%c0_7, %c0_8, %c0_9], %10 {strides = array<i32>} : memref<6x8x128xf32, #tpu.memory_space<vmem>>, vector<1x8x128xf32>,
    %c0_i32 = arith.constant 0 : i32
    %c1_i32 = arith.constant 1 : i32
    %11 = arith.addi %c1_i32, %c0_i32 : i32
    %12 = arith.index_cast %11 : i32 to index
    %13 = memref.load %arg1[%12] : memref<6xf32, #tpu.memory_space<smem>>
    %14 = arith.index_cast %c0_i32 : i32 to index
    %c0_10 = arith.constant 0 : index
    %c0_11 = arith.constant 0 : index
    %15 = vector.load %arg7[%14, %c0_10, %c0_11] : memref<6x8x128xf32, #tpu.memory_space<vmem>>, vector<1x8x128xf32>
    %16 = vector.shape_cast %15 : vector<1x8x128xf32> to vector<8x128xf32>
    %c1_i32_12 = arith.constant 1 : i32
    %17 = arith.subi %c0_i32, %c1_i32_12 : i32
    %c0_i32_13 = arith.constant 0 : i32
    %18 = arith.maxsi %17, %c0_i32_13 : i32
    %19 = arith.index_cast %18 : i32 to index
    %c0_14 = arith.constant 0 : index
    %c0_15 = arith.constant 0 : index
    %20 = vector.load %arg7[%19, %c0_14, %c0_15] : memref<6x8x128xf32, #tpu.memory_space<vmem>>, vector<1x8x128xf32>
    %21 = vector.shape_cast %20 : vector<1x8x128xf32> to vector<8x128xf32>
    %22 = arith.subf %16, %21 : vector<8x128xf32>
    %23 = vector.broadcast %13 : f32 to vector<8x128xf32>
    %24 = arith.mulf %23, %22 : vector<8x128xf32>
    %25 = arith.addf %16, %24 : vector<8x128xf32>
    %26 = arith.truncf %25 : vector<8x128xf32> to vector<8x128xbf16>
    %c0_16 = arith.constant 0 : index
    %c0_17 = arith.constant 0 : index
    %27 = vector.load %arg4[%c0_16, %c0_17] : memref<128x128xbf16, #tpu.memory_space<vmem>>, vector<128x128xbf16>
    %cst_18 = arith.constant dense<0.000000e+00> : vector<8x128xf32>
    %28 = tpu.matmul %26, %27, %cst_18 {dimension_numbers = #tpu.dot_dimension_numbers<[1], [0], [0], [1], [0, 0, 1, 1], [], []>} : vector<8x128xbf16>, vector<128x128xbf16>, vector<8x128xf32> -> vector<8x128xf32>
    %c0_19 = arith.constant 0 : index
    %c0_20 = arith.constant 0 : index
    %29 = vector.load %arg8[%c0_19, %c0_20] : memref<8x128xf32, #tpu.memory_space<vmem>>, vector<8x128xf32>
    %30 = arith.addf %28, %29 : vector<8x128xf32>
    %31 = arith.truncf %30 : vector<8x128xf32> to vector<8x128xbf16>
    %c0_21 = arith.constant 0 : index
    %c0_22 = arith.constant 0 : index
    %32 = vector.load %arg5[%c0_21, %c0_22] : memref<128x128xbf16, #tpu.memory_space<vmem>>, vector<128x128xbf16>
    %cst_23 = arith.constant dense<0.000000e+00> : vector<8x128xf32>
    %33 = tpu.matmul %31, %32, %cst_23 {dimension_numbers = #tpu.dot_dimension_numbers<[1], [0], [0], [1], [0, 0, 1, 1], [], []>} : vector<8x128xbf16>, vector<128x128xbf16>, vector<8x128xf32> -> vector<8x128xf32>
    %34 = vector.broadcast %1 : vector<1x128xf32> to vector<8x128xf32>
    %35 = arith.subf %33, %34 : vector<8x128xf32>
    %cst_24 = arith.constant 0.000000e+00 : f32
    %36 = vector.broadcast %cst_24 : f32 to vector<8x128xf32>
    %37 = arith.maximumf %35, %36 : vector<8x128xf32>
    %cst_25 = arith.constant 0.000000e+00 : f32
    %38 = vector.broadcast %cst_25 : f32 to vector<8x128xf32>
    %39 = arith.subf %38, %33 : vector<8x128xf32>
    %40 = vector.broadcast %1 : vector<1x128xf32> to vector<8x128xf32>
    %41 = arith.subf %39, %40 : vector<8x128xf32>
    %cst_26 = arith.constant 0.000000e+00 : f32
    %42 = vector.broadcast %cst_26 : f32 to vector<8x128xf32>
    %43 = arith.maximumf %41, %42 : vector<8x128xf32>
    %44 = arith.subf %37, %43 : vector<8x128xf32>
    %45 = arith.truncf %44 : vector<8x128xf32> to vector<8x128xbf16>
    %c0_27 = arith.constant 0 : index
    %c0_28 = arith.constant 0 : index
    %46 = vector.load %arg6[%c0_27, %c0_28] : memref<128x128xbf16, #tpu.memory_space<vmem>>, vector<128x128xbf16>
    %cst_29 = arith.constant dense<0.000000e+00> : vector<8x128xf32>
    %47 = tpu.matmul %45, %46, %cst_29 {dimension_numbers = #tpu.dot_dimension_numbers<[1], [0], [0], [1], [0, 0, 1, 1], [], []>} : vector<8x128xbf16>, vector<128x128xbf16>, vector<8x128xf32> -> vector<8x128xf32>
    %c1_i32_30 = arith.constant 1 : i32
    %48 = arith.addi %c0_i32, %c1_i32_30 : i32
    %49 = arith.index_cast %48 : i32 to index
    %c0_31 = arith.constant 0 : index
    %c0_32 = arith.constant 0 : index
    %50 = vector.load %arg7[%49, %c0_31, %c0_32] : memref<6x8x128xf32, #tpu.memory_space<vmem>>, vector<1x8x128xf32>
    %51 = vector.shape_cast %50 : vector<1x8x128xf32> to vector<8x128xf32>
    %52 = vector.shape_cast %47 : vector<8x128xf32> to vector<1x8x128xf32>
    tpu.vector_store %arg7[%49, %c0_31, %c0_32], %52 {strides = array<i32>} : memref<6x8x128xf32, #tpu.memory_space<vmem>>, vector<1x8x128xf32>,
    %c1_i32_33 = arith.constant 1 : i32
    %c1_i32_34 = arith.constant 1 : i32
    %53 = arith.addi %c1_i32_34, %c1_i32_33 : i32
    %54 = arith.index_cast %53 : i32 to index
    %55 = memref.load %arg1[%54] : memref<6xf32, #tpu.memory_space<smem>>
    %56 = arith.index_cast %c1_i32_33 : i32 to index
    %c0_35 = arith.constant 0 : index
    %c0_36 = arith.constant 0 : index
    %57 = vector.load %arg7[%56, %c0_35, %c0_36] : memref<6x8x128xf32, #tpu.memory_space<vmem>>, vector<1x8x128xf32>
    %58 = vector.shape_cast %57 : vector<1x8x128xf32> to vector<8x128xf32>
    %c1_i32_37 = arith.constant 1 : i32
    %59 = arith.subi %c1_i32_33, %c1_i32_37 : i32
    %c0_i32_38 = arith.constant 0 : i32
    %60 = arith.maxsi %59, %c0_i32_38 : i32
    %61 = arith.index_cast %60 : i32 to index
    %c0_39 = arith.constant 0 : index
    %c0_40 = arith.constant 0 : index
    %62 = vector.load %arg7[%61, %c0_39, %c0_40] : memref<6x8x128xf32, #tpu.memory_space<vmem>>, vector<1x8x128xf32>
    %63 = vector.shape_cast %62 : vector<1x8x128xf32> to vector<8x128xf32>
    %64 = arith.subf %58, %63 : vector<8x128xf32>
    %65 = vector.broadcast %55 : f32 to vector<8x128xf32>
    %66 = arith.mulf %65, %64 : vector<8x128xf32>
    %67 = arith.addf %58, %66 : vector<8x128xf32>
    %68 = arith.truncf %67 : vector<8x128xf32> to vector<8x128xbf16>
    %c0_41 = arith.constant 0 : index
    %c0_42 = arith.constant 0 : index
    %69 = vector.load %arg4[%c0_41, %c0_42] : memref<128x128xbf16, #tpu.memory_space<vmem>>, vector<128x128xbf16>
    %cst_43 = arith.constant dense<0.000000e+00> : vector<8x128xf32>
    %70 = tpu.matmul %68, %69, %cst_43 {dimension_numbers = #tpu.dot_dimension_numbers<[1], [0], [0], [1], [0, 0, 1, 1], [], []>} : vector<8x128xbf16>, vector<128x128xbf16>, vector<8x128xf32> -> vector<8x128xf32>
    %c0_44 = arith.constant 0 : index
    %c0_45 = arith.constant 0 : index
    %71 = vector.load %arg8[%c0_44, %c0_45] : memref<8x128xf32, #tpu.memory_space<vmem>>, vector<8x128xf32>
    %72 = arith.addf %70, %71 : vector<8x128xf32>
    %73 = arith.truncf %72 : vector<8x128xf32> to vector<8x128xbf16>
    %c0_46 = arith.constant 0 : index
    %c0_47 = arith.constant 0 : index
    %74 = vector.load %arg5[%c0_46, %c0_47] : memref<128x128xbf16, #tpu.memory_space<vmem>>, vector<128x128xbf16>
    %cst_48 = arith.constant dense<0.000000e+00> : vector<8x128xf32>
    %75 = tpu.matmul %73, %74, %cst_48 {dimension_numbers = #tpu.dot_dimension_numbers<[1], [0], [0], [1], [0, 0, 1, 1], [], []>} : vector<8x128xbf16>, vector<128x128xbf16>, vector<8x128xf32> -> vector<8x128xf32>
    %76 = vector.broadcast %1 : vector<1x128xf32> to vector<8x128xf32>
    %77 = arith.subf %75, %76 : vector<8x128xf32>
    %cst_49 = arith.constant 0.000000e+00 : f32
    %78 = vector.broadcast %cst_49 : f32 to vector<8x128xf32>
    %79 = arith.maximumf %77, %78 : vector<8x128xf32>
    %cst_50 = arith.constant 0.000000e+00 : f32
    %80 = vector.broadcast %cst_50 : f32 to vector<8x128xf32>
    %81 = arith.subf %80, %75 : vector<8x128xf32>
    %82 = vector.broadcast %1 : vector<1x128xf32> to vector<8x128xf32>
    %83 = arith.subf %81, %82 : vector<8x128xf32>
    %cst_51 = arith.constant 0.000000e+00 : f32
    %84 = vector.broadcast %cst_51 : f32 to vector<8x128xf32>
    %85 = arith.maximumf %83, %84 : vector<8x128xf32>
    %86 = arith.subf %79, %85 : vector<8x128xf32>
    %87 = arith.truncf %86 : vector<8x128xf32> to vector<8x128xbf16>
    %c0_52 = arith.constant 0 : index
    %c0_53 = arith.constant 0 : index
    %88 = vector.load %arg6[%c0_52, %c0_53] : memref<128x128xbf16, #tpu.memory_space<vmem>>, vector<128x128xbf16>
    %cst_54 = arith.constant dense<0.000000e+00> : vector<8x128xf32>
    %89 = tpu.matmul %87, %88, %cst_54 {dimension_numbers = #tpu.dot_dimension_numbers<[1], [0], [0], [1], [0, 0, 1, 1], [], []>} : vector<8x128xbf16>, vector<128x128xbf16>, vector<8x128xf32> -> vector<8x128xf32>
    %c1_i32_55 = arith.constant 1 : i32
    %90 = arith.addi %c1_i32_33, %c1_i32_55 : i32
    %91 = arith.index_cast %90 : i32 to index
    %c0_56 = arith.constant 0 : index
    %c0_57 = arith.constant 0 : index
    %92 = vector.load %arg7[%91, %c0_56, %c0_57] : memref<6x8x128xf32, #tpu.memory_space<vmem>>, vector<1x8x128xf32>
    %93 = vector.shape_cast %92 : vector<1x8x128xf32> to vector<8x128xf32>
    %94 = vector.shape_cast %89 : vector<8x128xf32> to vector<1x8x128xf32>
    tpu.vector_store %arg7[%91, %c0_56, %c0_57], %94 {strides = array<i32>} : memref<6x8x128xf32, #tpu.memory_space<vmem>>, vector<1x8x128xf32>,
    %c2_i32 = arith.constant 2 : i32
    %c1_i32_58 = arith.constant 1 : i32
    %95 = arith.addi %c1_i32_58, %c2_i32 : i32
    %96 = arith.index_cast %95 : i32 to index
    %97 = memref.load %arg1[%96] : memref<6xf32, #tpu.memory_space<smem>>
    %98 = arith.index_cast %c2_i32 : i32 to index
    %c0_59 = arith.constant 0 : index
    %c0_60 = arith.constant 0 : index
    %99 = vector.load %arg7[%98, %c0_59, %c0_60] : memref<6x8x128xf32, #tpu.memory_space<vmem>>, vector<1x8x128xf32>
    %100 = vector.shape_cast %99 : vector<1x8x128xf32> to vector<8x128xf32>
    %c1_i32_61 = arith.constant 1 : i32
    %101 = arith.subi %c2_i32, %c1_i32_61 : i32
    %c0_i32_62 = arith.constant 0 : i32
    %102 = arith.maxsi %101, %c0_i32_62 : i32
    %103 = arith.index_cast %102 : i32 to index
    %c0_63 = arith.constant 0 : index
    %c0_64 = arith.constant 0 : index
    %104 = vector.load %arg7[%103, %c0_63, %c0_64] : memref<6x8x128xf32, #tpu.memory_space<vmem>>, vector<1x8x128xf32>
    %105 = vector.shape_cast %104 : vector<1x8x128xf32> to vector<8x128xf32>
    %106 = arith.subf %100, %105 : vector<8x128xf32>
    %107 = vector.broadcast %97 : f32 to vector<8x128xf32>
    %108 = arith.mulf %107, %106 : vector<8x128xf32>
    %109 = arith.addf %100, %108 : vector<8x128xf32>
    %110 = arith.truncf %109 : vector<8x128xf32> to vector<8x128xbf16>
    %c0_65 = arith.constant 0 : index
    %c0_66 = arith.constant 0 : index
    %111 = vector.load %arg4[%c0_65, %c0_66] : memref<128x128xbf16, #tpu.memory_space<vmem>>, vector<128x128xbf16>
    %cst_67 = arith.constant dense<0.000000e+00> : vector<8x128xf32>
    %112 = tpu.matmul %110, %111, %cst_67 {dimension_numbers = #tpu.dot_dimension_numbers<[1], [0], [0], [1], [0, 0, 1, 1], [], []>} : vector<8x128xbf16>, vector<128x128xbf16>, vector<8x128xf32> -> vector<8x128xf32>
    %c0_68 = arith.constant 0 : index
    %c0_69 = arith.constant 0 : index
    %113 = vector.load %arg8[%c0_68, %c0_69] : memref<8x128xf32, #tpu.memory_space<vmem>>, vector<8x128xf32>
    %114 = arith.addf %112, %113 : vector<8x128xf32>
    %115 = arith.truncf %114 : vector<8x128xf32> to vector<8x128xbf16>
    %c0_70 = arith.constant 0 : index
    %c0_71 = arith.constant 0 : index
    %116 = vector.load %arg5[%c0_70, %c0_71] : memref<128x128xbf16, #tpu.memory_space<vmem>>, vector<128x128xbf16>
    %cst_72 = arith.constant dense<0.000000e+00> : vector<8x128xf32>
    %117 = tpu.matmul %115, %116, %cst_72 {dimension_numbers = #tpu.dot_dimension_numbers<[1], [0], [0], [1], [0, 0, 1, 1], [], []>} : vector<8x128xbf16>, vector<128x128xbf16>, vector<8x128xf32> -> vector<8x128xf32>
    %118 = vector.broadcast %1 : vector<1x128xf32> to vector<8x128xf32>
    %119 = arith.subf %117, %118 : vector<8x128xf32>
    %cst_73 = arith.constant 0.000000e+00 : f32
    %120 = vector.broadcast %cst_73 : f32 to vector<8x128xf32>
    %121 = arith.maximumf %119, %120 : vector<8x128xf32>
    %cst_74 = arith.constant 0.000000e+00 : f32
    %122 = vector.broadcast %cst_74 : f32 to vector<8x128xf32>
    %123 = arith.subf %122, %117 : vector<8x128xf32>
    %124 = vector.broadcast %1 : vector<1x128xf32> to vector<8x128xf32>
    %125 = arith.subf %123, %124 : vector<8x128xf32>
    %cst_75 = arith.constant 0.000000e+00 : f32
    %126 = vector.broadcast %cst_75 : f32 to vector<8x128xf32>
    %127 = arith.maximumf %125, %126 : vector<8x128xf32>
    %128 = arith.subf %121, %127 : vector<8x128xf32>
    %129 = arith.truncf %128 : vector<8x128xf32> to vector<8x128xbf16>
    %c0_76 = arith.constant 0 : index
    %c0_77 = arith.constant 0 : index
    %130 = vector.load %arg6[%c0_76, %c0_77] : memref<128x128xbf16, #tpu.memory_space<vmem>>, vector<128x128xbf16>
    %cst_78 = arith.constant dense<0.000000e+00> : vector<8x128xf32>
    %131 = tpu.matmul %129, %130, %cst_78 {dimension_numbers = #tpu.dot_dimension_numbers<[1], [0], [0], [1], [0, 0, 1, 1], [], []>} : vector<8x128xbf16>, vector<128x128xbf16>, vector<8x128xf32> -> vector<8x128xf32>
    %c1_i32_79 = arith.constant 1 : i32
    %132 = arith.addi %c2_i32, %c1_i32_79 : i32
    %133 = arith.index_cast %132 : i32 to index
    %c0_80 = arith.constant 0 : index
    %c0_81 = arith.constant 0 : index
    %134 = vector.load %arg7[%133, %c0_80, %c0_81] : memref<6x8x128xf32, #tpu.memory_space<vmem>>, vector<1x8x128xf32>
    %135 = vector.shape_cast %134 : vector<1x8x128xf32> to vector<8x128xf32>
    %136 = vector.shape_cast %131 : vector<8x128xf32> to vector<1x8x128xf32>
    tpu.vector_store %arg7[%133, %c0_80, %c0_81], %136 {strides = array<i32>} : memref<6x8x128xf32, #tpu.memory_space<vmem>>, vector<1x8x128xf32>,
    %c3_i32 = arith.constant 3 : i32
    %c1_i32_82 = arith.constant 1 : i32
    %137 = arith.addi %c1_i32_82, %c3_i32 : i32
    %138 = arith.index_cast %137 : i32 to index
    %139 = memref.load %arg1[%138] : memref<6xf32, #tpu.memory_space<smem>>
    %140 = arith.index_cast %c3_i32 : i32 to index
    %c0_83 = arith.constant 0 : index
    %c0_84 = arith.constant 0 : index
    %141 = vector.load %arg7[%140, %c0_83, %c0_84] : memref<6x8x128xf32, #tpu.memory_space<vmem>>, vector<1x8x128xf32>
    %142 = vector.shape_cast %141 : vector<1x8x128xf32> to vector<8x128xf32>
    %c1_i32_85 = arith.constant 1 : i32
    %143 = arith.subi %c3_i32, %c1_i32_85 : i32
    %c0_i32_86 = arith.constant 0 : i32
    %144 = arith.maxsi %143, %c0_i32_86 : i32
    %145 = arith.index_cast %144 : i32 to index
    %c0_87 = arith.constant 0 : index
    %c0_88 = arith.constant 0 : index
    %146 = vector.load %arg7[%145, %c0_87, %c0_88] : memref<6x8x128xf32, #tpu.memory_space<vmem>>, vector<1x8x128xf32>
    %147 = vector.shape_cast %146 : vector<1x8x128xf32> to vector<8x128xf32>
    %148 = arith.subf %142, %147 : vector<8x128xf32>
    %149 = vector.broadcast %139 : f32 to vector<8x128xf32>
    %150 = arith.mulf %149, %148 : vector<8x128xf32>
    %151 = arith.addf %142, %150 : vector<8x128xf32>
    %152 = arith.truncf %151 : vector<8x128xf32> to vector<8x128xbf16>
    %c0_89 = arith.constant 0 : index
    %c0_90 = arith.constant 0 : index
    %153 = vector.load %arg4[%c0_89, %c0_90] : memref<128x128xbf16, #tpu.memory_space<vmem>>, vector<128x128xbf16>
    %cst_91 = arith.constant dense<0.000000e+00> : vector<8x128xf32>
    %154 = tpu.matmul %152, %153, %cst_91 {dimension_numbers = #tpu.dot_dimension_numbers<[1], [0], [0], [1], [0, 0, 1, 1], [], []>} : vector<8x128xbf16>, vector<128x128xbf16>, vector<8x128xf32> -> vector<8x128xf32>
    %c0_92 = arith.constant 0 : index
    %c0_93 = arith.constant 0 : index
    %155 = vector.load %arg8[%c0_92, %c0_93] : memref<8x128xf32, #tpu.memory_space<vmem>>, vector<8x128xf32>
    %156 = arith.addf %154, %155 : vector<8x128xf32>
    %157 = arith.truncf %156 : vector<8x128xf32> to vector<8x128xbf16>
    %c0_94 = arith.constant 0 : index
    %c0_95 = arith.constant 0 : index
    %158 = vector.load %arg5[%c0_94, %c0_95] : memref<128x128xbf16, #tpu.memory_space<vmem>>, vector<128x128xbf16>
    %cst_96 = arith.constant dense<0.000000e+00> : vector<8x128xf32>
    %159 = tpu.matmul %157, %158, %cst_96 {dimension_numbers = #tpu.dot_dimension_numbers<[1], [0], [0], [1], [0, 0, 1, 1], [], []>} : vector<8x128xbf16>, vector<128x128xbf16>, vector<8x128xf32> -> vector<8x128xf32>
    %160 = vector.broadcast %1 : vector<1x128xf32> to vector<8x128xf32>
    %161 = arith.subf %159, %160 : vector<8x128xf32>
    %cst_97 = arith.constant 0.000000e+00 : f32
    %162 = vector.broadcast %cst_97 : f32 to vector<8x128xf32>
    %163 = arith.maximumf %161, %162 : vector<8x128xf32>
    %cst_98 = arith.constant 0.000000e+00 : f32
    %164 = vector.broadcast %cst_98 : f32 to vector<8x128xf32>
    %165 = arith.subf %164, %159 : vector<8x128xf32>
    %166 = vector.broadcast %1 : vector<1x128xf32> to vector<8x128xf32>
    %167 = arith.subf %165, %166 : vector<8x128xf32>
    %cst_99 = arith.constant 0.000000e+00 : f32
    %168 = vector.broadcast %cst_99 : f32 to vector<8x128xf32>
    %169 = arith.maximumf %167, %168 : vector<8x128xf32>
    %170 = arith.subf %163, %169 : vector<8x128xf32>
    %171 = arith.truncf %170 : vector<8x128xf32> to vector<8x128xbf16>
    %c0_100 = arith.constant 0 : index
    %c0_101 = arith.constant 0 : index
    %172 = vector.load %arg6[%c0_100, %c0_101] : memref<128x128xbf16, #tpu.memory_space<vmem>>, vector<128x128xbf16>
    %cst_102 = arith.constant dense<0.000000e+00> : vector<8x128xf32>
    %173 = tpu.matmul %171, %172, %cst_102 {dimension_numbers = #tpu.dot_dimension_numbers<[1], [0], [0], [1], [0, 0, 1, 1], [], []>} : vector<8x128xbf16>, vector<128x128xbf16>, vector<8x128xf32> -> vector<8x128xf32>
    %c1_i32_103 = arith.constant 1 : i32
    %174 = arith.addi %c3_i32, %c1_i32_103 : i32
    %175 = arith.index_cast %174 : i32 to index
    %c0_104 = arith.constant 0 : index
    %c0_105 = arith.constant 0 : index
    %176 = vector.load %arg7[%175, %c0_104, %c0_105] : memref<6x8x128xf32, #tpu.memory_space<vmem>>, vector<1x8x128xf32>
    %177 = vector.shape_cast %176 : vector<1x8x128xf32> to vector<8x128xf32>
    %178 = vector.shape_cast %173 : vector<8x128xf32> to vector<1x8x128xf32>
    tpu.vector_store %arg7[%175, %c0_104, %c0_105], %178 {strides = array<i32>} : memref<6x8x128xf32, #tpu.memory_space<vmem>>, vector<1x8x128xf32>,
    %c4_i32 = arith.constant 4 : i32
    %c1_i32_106 = arith.constant 1 : i32
    %179 = arith.addi %c1_i32_106, %c4_i32 : i32
    %180 = arith.index_cast %179 : i32 to index
    %181 = memref.load %arg1[%180] : memref<6xf32, #tpu.memory_space<smem>>
    %182 = arith.index_cast %c4_i32 : i32 to index
    %c0_107 = arith.constant 0 : index
    %c0_108 = arith.constant 0 : index
    %183 = vector.load %arg7[%182, %c0_107, %c0_108] : memref<6x8x128xf32, #tpu.memory_space<vmem>>, vector<1x8x128xf32>
    %184 = vector.shape_cast %183 : vector<1x8x128xf32> to vector<8x128xf32>
    %c1_i32_109 = arith.constant 1 : i32
    %185 = arith.subi %c4_i32, %c1_i32_109 : i32
    %c0_i32_110 = arith.constant 0 : i32
    %186 = arith.maxsi %185, %c0_i32_110 : i32
    %187 = arith.index_cast %186 : i32 to index
    %c0_111 = arith.constant 0 : index
    %c0_112 = arith.constant 0 : index
    %188 = vector.load %arg7[%187, %c0_111, %c0_112] : memref<6x8x128xf32, #tpu.memory_space<vmem>>, vector<1x8x128xf32>
    %189 = vector.shape_cast %188 : vector<1x8x128xf32> to vector<8x128xf32>
    %190 = arith.subf %184, %189 : vector<8x128xf32>
    %191 = vector.broadcast %181 : f32 to vector<8x128xf32>
    %192 = arith.mulf %191, %190 : vector<8x128xf32>
    %193 = arith.addf %184, %192 : vector<8x128xf32>
    %194 = arith.truncf %193 : vector<8x128xf32> to vector<8x128xbf16>
    %c0_113 = arith.constant 0 : index
    %c0_114 = arith.constant 0 : index
    %195 = vector.load %arg4[%c0_113, %c0_114] : memref<128x128xbf16, #tpu.memory_space<vmem>>, vector<128x128xbf16>
    %cst_115 = arith.constant dense<0.000000e+00> : vector<8x128xf32>
    %196 = tpu.matmul %194, %195, %cst_115 {dimension_numbers = #tpu.dot_dimension_numbers<[1], [0], [0], [1], [0, 0, 1, 1], [], []>} : vector<8x128xbf16>, vector<128x128xbf16>, vector<8x128xf32> -> vector<8x128xf32>
    %c0_116 = arith.constant 0 : index
    %c0_117 = arith.constant 0 : index
    %197 = vector.load %arg8[%c0_116, %c0_117] : memref<8x128xf32, #tpu.memory_space<vmem>>, vector<8x128xf32>
    %198 = arith.addf %196, %197 : vector<8x128xf32>
    %199 = arith.truncf %198 : vector<8x128xf32> to vector<8x128xbf16>
    %c0_118 = arith.constant 0 : index
    %c0_119 = arith.constant 0 : index
    %200 = vector.load %arg5[%c0_118, %c0_119] : memref<128x128xbf16, #tpu.memory_space<vmem>>, vector<128x128xbf16>
    %cst_120 = arith.constant dense<0.000000e+00> : vector<8x128xf32>
    %201 = tpu.matmul %199, %200, %cst_120 {dimension_numbers = #tpu.dot_dimension_numbers<[1], [0], [0], [1], [0, 0, 1, 1], [], []>} : vector<8x128xbf16>, vector<128x128xbf16>, vector<8x128xf32> -> vector<8x128xf32>
    %202 = vector.broadcast %1 : vector<1x128xf32> to vector<8x128xf32>
    %203 = arith.subf %201, %202 : vector<8x128xf32>
    %cst_121 = arith.constant 0.000000e+00 : f32
    %204 = vector.broadcast %cst_121 : f32 to vector<8x128xf32>
    %205 = arith.maximumf %203, %204 : vector<8x128xf32>
    %cst_122 = arith.constant 0.000000e+00 : f32
    %206 = vector.broadcast %cst_122 : f32 to vector<8x128xf32>
    %207 = arith.subf %206, %201 : vector<8x128xf32>
    %208 = vector.broadcast %1 : vector<1x128xf32> to vector<8x128xf32>
    %209 = arith.subf %207, %208 : vector<8x128xf32>
    %cst_123 = arith.constant 0.000000e+00 : f32
    %210 = vector.broadcast %cst_123 : f32 to vector<8x128xf32>
    %211 = arith.maximumf %209, %210 : vector<8x128xf32>
    %212 = arith.subf %205, %211 : vector<8x128xf32>
    %213 = arith.truncf %212 : vector<8x128xf32> to vector<8x128xbf16>
    %c0_124 = arith.constant 0 : index
    %c0_125 = arith.constant 0 : index
    %214 = vector.load %arg6[%c0_124, %c0_125] : memref<128x128xbf16, #tpu.memory_space<vmem>>, vector<128x128xbf16>
    %cst_126 = arith.constant dense<0.000000e+00> : vector<8x128xf32>
    %215 = tpu.matmul %213, %214, %cst_126 {dimension_numbers = #tpu.dot_dimension_numbers<[1], [0], [0], [1], [0, 0, 1, 1], [], []>} : vector<8x128xbf16>, vector<128x128xbf16>, vector<8x128xf32> -> vector<8x128xf32>
    %c1_i32_127 = arith.constant 1 : i32
    %216 = arith.addi %c4_i32, %c1_i32_127 : i32
    %217 = arith.index_cast %216 : i32 to index
    %c0_128 = arith.constant 0 : index
    %c0_129 = arith.constant 0 : index
    %218 = vector.load %arg7[%217, %c0_128, %c0_129] : memref<6x8x128xf32, #tpu.memory_space<vmem>>, vector<1x8x128xf32>
    %219 = vector.shape_cast %218 : vector<1x8x128xf32> to vector<8x128xf32>
    %220 = vector.shape_cast %215 : vector<8x128xf32> to vector<1x8x128xf32>
    tpu.vector_store %arg7[%217, %c0_128, %c0_129], %220 {strides = array<i32>} : memref<6x8x128xf32, #tpu.memory_space<vmem>>, vector<1x8x128xf32>,
    %c5_i32 = arith.constant 5 : i32
    return
  }
  func.func @transform_0(%arg0: i32) -> i32 {
    %c0_i32 = arith.constant 0 : i32
    %c0_i32_0 = arith.constant 0 : i32
    return %c0_i32 : i32
  }
  func.func @transform_1(%arg0: i32) -> (i32, i32) {
    %c0_i32 = arith.constant 0 : i32
    %c0_i32_0 = arith.constant 0 : i32
    return %arg0, %c0_i32 : i32, i32
  }
  func.func @transform_2(%arg0: i32) -> (i32, i32) {
    %c0_i32 = arith.constant 0 : i32
    %c0_i32_0 = arith.constant 0 : i32
    %c0_i32_1 = arith.constant 0 : i32
    return %c0_i32, %c0_i32_0 : i32, i32
  }
  func.func @transform_3(%arg0: i32) -> (i32, i32) {
    %c0_i32 = arith.constant 0 : i32
    %c0_i32_0 = arith.constant 0 : i32
    %c0_i32_1 = arith.constant 0 : i32
    return %c0_i32, %c0_i32_0 : i32, i32
  }
  func.func @transform_4(%arg0: i32) -> (i32, i32) {
    %c0_i32 = arith.constant 0 : i32
    %c0_i32_0 = arith.constant 0 : i32
    %c0_i32_1 = arith.constant 0 : i32
    return %c0_i32, %c0_i32_0 : i32, i32
  }
  func.func @transform_5(%arg0: i32) -> (i32, i32) {
    %c0_i32 = arith.constant 0 : i32
    %c0_i32_0 = arith.constant 0 : i32
    %c0_i32_1 = arith.constant 0 : i32
    return %c0_i32, %c0_i32_0 : i32, i32
  }
  func.func @transform_6(%arg0: i32) -> (i32, i32, i32) {
    %c0_i32 = arith.constant 0 : i32
    %c0_i32_0 = arith.constant 0 : i32
    %c0_i32_1 = arith.constant 0 : i32
    return %c0_i32, %arg0, %c0_i32_0 : i32, i32, i32
  }
}

</mosaic_0001>

<bundles_post_ra>
// kernel: tpu_custom_call.1
= control target key start
LH: loop header
LB: loop body
LE: loop exit
PB: predicated region body
PF: predicated region fallthrough
CT: control target
= control target key end

     0   :  { %11 = vsyncpa [#allocation6], 0  ;;  %s2407_s0 = inlined_call_operand.hbm [shape: f32[6], index: 0, kind: input, shape index: {}]   ;;  %s2408_s1 = inlined_call_operand.hbm [shape: f32[8,128], index: 1, kind: input, shape index: {}]   ;;  %s2409_s2 = inlined_call_operand.hbm [shape: bf16[128,128], index: 2, kind: input, shape index: {}]   ;;  %s2410_s3 = inlined_call_operand.hbm [shape: bf16[128,128], index: 3, kind: input, shape index: {}]   ;;  %s2411_s4 = inlined_call_operand.hbm [shape: bf16[128,128], index: 4, kind: input, shape index: {}]   ;;  %s2412_s5 = inlined_call_operand.hbm [shape: bf16[128,128], index: 5, kind: input, shape index: {}]   ;;  %s2413_s6 = inlined_call_operand.hbm [shape: f32[6,8,128], index: 6, kind: output, shape index: {}]  }
   0x1   :  { %12 = vsyncpa [#allocation4], 0 }
   0x2   :  { %13 = vsyncpa [#allocation9], 0 }
   0x3   :  { %14 = vsyncpa [#allocation12], 0  ;;  %s40_s23 = sshll.u32 %s2409_s2, 4  ;;  %s41_s23 = int_to_ptr.hbm [resolvable:$true] %s40_s23 }
   0x4   :  { %15 = vsyncpa [#allocation5], 0  ;;  %s2290_s24 = smov [#allocation8]   ;;  %s66_s28 = sshll.u32 %s2411_s4, 4  ;;  %s67_s28 = int_to_ptr.hbm [resolvable:$true] %s66_s28 }
   0x5   :  { %s42_s25 = sshll.u32 %s2290_s24, 4  ;;  %s2291_s29 = smov 64   ;;  %s43_s25 = int_to_ptr.vmem [resolvable:$true] %s42_s25 }
   0x6   :  { %s2292_s30 = smov 4   ;;  %s2293_s7 = smov [#allocation11]  }
   0x7   :  { %48 = dma.hbm_to_vmem [thread:$0]  %s41_s23, 1024, %s43_s25, [#allocation9], %s2291_s29, %s2291_s29, %s2292_s30  }
   0x8   :  { %s68_s8 = sshll.u32 %s2293_s7, 4  ;;  %s21_s10 = sshll.u32 %s2407_s0, 4  ;;  %s69_s8 = int_to_ptr.vmem [resolvable:$true] %s68_s8  ;;  %s22_s10 = int_to_ptr.hbm [resolvable:$true] %s21_s10 }
   0x9   :  { %74 = dma.hbm_to_vmem [thread:$0]  %s67_s28, 1024, %s69_s8, [#allocation12], %s2291_s29, %s2291_s29, %s2292_s30  }
   0xa   :  { %s30_s12 = sshll.u32 %s2408_s1, 4  ;;  %s2294_s13 = smov [#allocation3]   ;;  %s31_s12 = int_to_ptr.hbm [resolvable:$true] %s30_s12 }
   0xb   :  { %24 = dma.hbm_to_smem %s22_s10, 16, %s2294_s13, [#allocation6]  }
   0xc   :  { %s2295_s14 = smov [#allocation7]   ;;  %s53_s18 = sshll.u32 %s2410_s3, 4  ;;  %s54_s18 = int_to_ptr.hbm [resolvable:$true] %s53_s18 }
   0xd   :  { %s32_s15 = sshll.u32 %s2295_s14, 4  ;;  %s79_s20 = sshll.u32 %s2412_s5, 4  ;;  %s33_s15 = int_to_ptr.vmem [resolvable:$true] %s32_s15  ;;  %s80_s20 = int_to_ptr.hbm [resolvable:$true] %s79_s20 }
   0xe   :  { %35 = dma.hbm_to_vmem [thread:$0]  %s31_s12, 128, %s33_s15, [#allocation4]  }
   0xf   :  { %s2296_s21 = smov [#allocation10]   ;;  %s2297_s1 = smov [#allocation13]  }
  0x10   :  { %s55_s22 = sshll.u32 %s2296_s21, 4  ;;  %s81_s23 = sshll.u32 %s2297_s1, 4  ;;  %s56_s22 = int_to_ptr.vmem [resolvable:$true] %s55_s22  ;;  %s82_s23 = int_to_ptr.vmem [resolvable:$true] %s81_s23 }
  0x11   :  { %61 = dma.hbm_to_vmem [thread:$0]  %s54_s18, 1024, %s56_s22, [#allocation9], %s2291_s29, %s2291_s29, %s2292_s30  }
  0x12   :  { %87 = dma.hbm_to_vmem [thread:$0]  %s80_s20, 1024, %s82_s23, [#allocation12], %s2291_s29, %s2291_s29, %s2292_s30  }
  0x13   :  { %2280 = dma.done.wait [#allocation6], 16  }
  0x14   :  { %2281 = vsyncadd [#allocation6], 4294967280 }
  0x15   :  { %2282 = dma.done.wait [#allocation4], 128  }
  0x16   :  { %2283 = vsyncadd [#allocation4], 4294967168 }
  0x17   :  { %2284 = dma.done.wait [#allocation9], 2048  }
  0x18   :  { %2285 = vsyncadd [#allocation9], 4294965248 }
  0x19   :  { %2286 = dma.done.wait [#allocation12], 2048  }
  0x1a   :  { %2287 = vsyncadd [#allocation12], 4294965248 }
  0x1b   :  { %112 = sfence }
  0x1c   :  { %v1991_v0 = vld [vmem:[#allocation8 + $0x38] sm:$0xff]  ;;  %v2298_v2 = vmov 0.0   ;;  %v1990_v3 = vld [vmem:[#allocation8 + $0x30] sm:$0xff]  ;;  %v1989_v6 = vld [vmem:[#allocation8 + $0x28] sm:$0xff]  ;;  %s1499_s3 = sld [smem:[#allocation3 + $0x1]]  ;;  %s2299_s28 = smov [#allocation14]  }
  0x1d   :  { %v1999_v1 = vld [vmem:[#allocation10 + $0x38] sm:$0xff]  ;;  %194 = vst [vmem:[#allocation14] sm:$0xff] %v2298_v2  ;;  %180 = vmatpush.bf16.msra.mxu0 %v1991_v0  ;;  %v1998_v4 = vld [vmem:[#allocation10 + $0x30] sm:$0xff]  ;;  %v1997_v7 = vld [vmem:[#allocation10 + $0x28] sm:$0xff]  ;;  %s113_s5 = sld [smem:[#allocation3]]  ;;  %s1449_s29 = sshll.u32 %s2299_s28, 4  ;;  %s1450_s29 = int_to_ptr.vmem [resolvable:$true] %s1449_s29 }
  0x1e   :  { %267 = vmatpush.bf16.msra.mxu1 %v1999_v1  ;;  %v2007_v5 = vld [vmem:[#allocation11 + $0x38] sm:$0xff]  ;;  %v2006_v8 = vld [vmem:[#allocation11 + $0x30] sm:$0xff]  ;;  %v1988_v9 = vld [vmem:[#allocation8 + $0x20] sm:$0xff]  ;;  %s1596_s24 = sld [smem:[#allocation3 + $0x2]]  ;;  %s1451_s8 = sshll.u32 %s2413_s6, 4  ;;  %s1452_s8 = int_to_ptr.hbm [resolvable:$true] %s1451_s8 }
  0x1f   :  { %345 = vmatpush.bf16.msra.mxu2 %v2007_v5  ;;  %v1996_v10 = vld [vmem:[#allocation10 + $0x20] sm:$0xff]  ;;  %v2005_v11 = vld [vmem:[#allocation11 + $0x28] sm:$0xff]  ;;  %v1987_v12 = vld [vmem:[#allocation8 + $0x18] sm:$0xff]  ;;  %s1693_s25 = sld [smem:[#allocation3 + $0x3]]  ;;  %s2300_s9 = smov 128  }
  0x20   :  { %v1995_v13 = vld [vmem:[#allocation10 + $0x18] sm:$0xff]  ;;  %v2004_v14 = vld [vmem:[#allocation11 + $0x20] sm:$0xff]  ;;  %v1986_v15 = vld [vmem:[#allocation8 + $0x10] sm:$0xff]  ;;  %s1790_s26 = sld [smem:[#allocation3 + $0x4]]  ;;  %s2301_s2 = smov 8  }
  0x21   :  { %181 = vmatpush.bf16.msra.mxu0 %v1990_v3  ;;  %v1994_v16 = vld [vmem:[#allocation10 + $0x10] sm:$0xff]  ;;  %v2003_v18 = vld [vmem:[#allocation11 + $0x18] sm:$0xff]  ;;  %v1985_v20 = vld [vmem:[#allocation8 + $0x8] sm:$0xff]  ;;  %s1887_s27 = sld [smem:[#allocation3 + $0x5]] }
  0x22   :  { %268 = vmatpush.bf16.msra.mxu1 %v1998_v4  ;;  %v198_v17 = vstv %s1499_s3  ;;  %v1993_v21 = vld [vmem:[#allocation10 + $0x8] sm:$0xff]  ;;  %v2002_v22 = vld [vmem:[#allocation11 + $0x10] sm:$0xff]  ;;  %v1984_v23 = vld [vmem:[#allocation8] sm:$0xff] }
  0x23   :  { %346 = vmatpush.bf16.msra.mxu2 %v2006_v8  ;;  %v199_v19 = vmul.f32 0.0, %v198_v17  ;;  %v1992_v24 = vld [vmem:[#allocation10] sm:$0xff]  ;;  %v114_v25 = vld [vmem:[#allocation7] sm:$0xff]  ;;  %v2001_v26 = vld [vmem:[#allocation11 + $0x8] sm:$0xff]  ;;  %v2370_v48 = vstv %s113_s5 }
  0x24   :  { %v115_v27 = vpack.c.bf16 %v114_v25, %v114_v25  ;;  %v2000_v29 = vld [vmem:[#allocation11] sm:$0xff]  ;;  %v2015_v30 = vld [vmem:[#allocation13 + $0x38] sm:$0xff]  ;;  %v2014_v31 = vld [vmem:[#allocation13 + $0x30] sm:$0xff] }
  0x25   :  { %182 = vmatpush.bf16.msra.mxu0 %v1989_v6  ;;  %v201_v28 = vpack.c.bf16 %v199_v19, %v199_v19  ;;  %430 = vmatpush.bf16.msra.mxu3 %v2015_v30  ;;  %v2013_v32 = vld [vmem:[#allocation13 + $0x28] sm:$0xff]  ;;  %v2012_v33 = vld [vmem:[#allocation13 + $0x20] sm:$0xff]  ;;  %v2011_v34 = vld [vmem:[#allocation13 + $0x18] sm:$0xff]  ;;  %v449_v6 = vstv %s1596_s24 }
  0x26   :  { %269 = vmatpush.bf16.msra.mxu1 %v1997_v7  ;;  %v2010_v41 = vld [vmem:[#allocation13 + $0x10] sm:$0xff]  ;;  %v2009_v42 = vld [vmem:[#allocation13 + $0x8] sm:$0xff]  ;;  %v2008_v43 = vld [vmem:[#allocation13] sm:$0xff] }
  0x27   :  { %347 = vmatpush.bf16.msra.mxu2 %v2005_v11  ;;  %v2023_v44 = vld [vmem:[#allocation10 + $0x38] sm:$0xff]  ;;  %v2022_v45 = vld [vmem:[#allocation10 + $0x30] sm:$0xff]  ;;  %v2021_v46 = vld [vmem:[#allocation10 + $0x28] sm:$0xff] }
  0x28   :  { %v2020_v47 = vld [vmem:[#allocation10 + $0x20] sm:$0xff]  ;;  %v2019_v58 = vld [vmem:[#allocation10 + $0x18] sm:$0xff]  ;;  %v2018_v59 = vld [vmem:[#allocation10 + $0x10] sm:$0xff] }
  0x29   :  { %183 = vmatpush.bf16.msra.mxu0 %v1988_v9  ;;  %431 = vmatpush.bf16.msra.mxu3 %v2014_v31  ;;  %v2017_v60 = vld [vmem:[#allocation10 + $0x8] sm:$0xff]  ;;  %v2016_v61 = vld [vmem:[#allocation10] sm:$0xff]  ;;  %v2031_v62 = vld [vmem:[#allocation11 + $0x38] sm:$0xff] }
  0x2a   :  { %270 = vmatpush.bf16.msra.mxu1 %v1996_v10  ;;  %v2030_v63 = vld [vmem:[#allocation11 + $0x30] sm:$0xff]  ;;  %v2029_v0 = vld [vmem:[#allocation11 + $0x28] sm:$0xff]  ;;  %v2028_v1 = vld [vmem:[#allocation11 + $0x20] sm:$0xff] }
  0x2b   :  { %348 = vmatpush.bf16.msra.mxu2 %v2004_v14  ;;  %v2027_v2 = vld [vmem:[#allocation11 + $0x18] sm:$0xff]  ;;  %v2026_v3 = vld [vmem:[#allocation11 + $0x10] sm:$0xff]  ;;  %v2025_v4 = vld [vmem:[#allocation11 + $0x8] sm:$0xff] }
  0x2c   :  { %v2024_v11 = vld [vmem:[#allocation11] sm:$0xff]  ;;  %v2037_v14 = vld [vmem:[#allocation13 + $0x28] sm:$0xff]  ;;  %v2046_v25 = vld [vmem:[#allocation10 + $0x30] sm:$0xff] }
  0x2d   :  { %184 = vmatpush.bf16.msra.mxu0 %v1987_v12  ;;  %432 = vmatpush.bf16.msra.mxu3 %v2013_v32  ;;  %v2039_v12 = vld [vmem:[#allocation13 + $0x38] sm:$0xff] }
  0x2e   :  { %271 = vmatpush.bf16.msra.mxu1 %v1995_v13  ;;  %v2038_v13 = vld [vmem:[#allocation13 + $0x30] sm:$0xff] }
  0x2f   :  { %349 = vmatpush.bf16.msra.mxu2 %v2003_v18 }
  0x31   :  { %185 = vmatpush.bf16.msra.mxu0 %v1986_v15  ;;  %433 = vmatpush.bf16.msra.mxu3 %v2012_v33  ;;  %v2036_v15 = vld [vmem:[#allocation13 + $0x20] sm:$0xff] }
  0x32   :  { %272 = vmatpush.bf16.msra.mxu1 %v1994_v16  ;;  %v2035_v16 = vld [vmem:[#allocation13 + $0x18] sm:$0xff] }
  0x33   :  { %350 = vmatpush.bf16.msra.mxu2 %v2002_v22  ;;  %v2033_v22 = vld [vmem:[#allocation13 + $0x8] sm:$0xff] }
  0x35   :  { %186 = vmatpush.bf16.msra.mxu0 %v1985_v20  ;;  %434 = vmatpush.bf16.msra.mxu3 %v2011_v34 }
  0x36   :  { %273 = vmatpush.bf16.msra.mxu1 %v1993_v21  ;;  %v2034_v21 = vld [vmem:[#allocation13 + $0x10] sm:$0xff] }
  0x37   :  { %351 = vmatpush.bf16.msra.mxu2 %v2001_v26  ;;  %v2045_v26 = vld [vmem:[#allocation10 + $0x28] sm:$0xff] }
  0x39   :  { %187 = vmatpush.bf16.msra.mxu0 %v1984_v23  ;;  %435 = vmatpush.bf16.msra.mxu3 %v2010_v41  ;;  %v2032_v23 = vld [vmem:[#allocation13] sm:$0xff] }
  0x3a   :  { %274 = vmatpush.bf16.msra.mxu1 %v1992_v24  ;;  %v2047_v24 = vld [vmem:[#allocation10 + $0x38] sm:$0xff]  ;;  %v2040_v41 = vld [vmem:[#allocation10] sm:$0xff] }
  0x3b   :  { %352 = vmatpush.bf16.msra.mxu2 %v2000_v29 }
  0x3c   :  { %188 = vmatmul.bf16.vlgmr.msra.gmra.mxu0 %v115_v27  ;;  %v2044_v27 = vld [vmem:[#allocation10 + $0x20] sm:$0xff] }
  0x3d   :  { %275 = vmatmul.bf16.vlgmr.msra.gmra.mxu1 %v201_v28  ;;  %436 = vmatpush.bf16.msra.mxu3 %v2009_v42  ;;  %v2055_v42 = vld [vmem:[#allocation11 + $0x38] sm:$0xff] }
  0x3e   :  { %518 = vmatpush.bf16.msrb.mxu0 %v2023_v44  ;;  %596 = vmatpush.bf16.msrb.mxu1 %v2031_v62  ;;  %v2053_v44 = vld [vmem:[#allocation11 + $0x28] sm:$0xff]  ;;  %v2059_v62 = vld [vmem:[#allocation13 + $0x18] sm:$0xff] }
  0x3f   :  { %680 = vmatpush.bf16.msrb.mxu2 %v2039_v12 }
  0x41   :  { %437 = vmatpush.bf16.msra.mxu3 %v2008_v43  ;;  %v2054_v43 = vld [vmem:[#allocation11 + $0x30] sm:$0xff] }
  0x42   :  { %519 = vmatpush.bf16.msrb.mxu0 %v2022_v45  ;;  %597 = vmatpush.bf16.msrb.mxu1 %v2030_v63  ;;  %v2052_v45 = vld [vmem:[#allocation11 + $0x20] sm:$0xff] }
  0x43   :  { %681 = vmatpush.bf16.msrb.mxu2 %v2038_v13 }
  0x45   :  { %768 = vmatpush.bf16.msrb.mxu3 %v2047_v24  ;;  %v2078_v24 = vld [vmem:[#allocation11 + $0x30] sm:$0xff] }
  0x46   :  { %520 = vmatpush.bf16.msrb.mxu0 %v2021_v46  ;;  %598 = vmatpush.bf16.msrb.mxu1 %v2029_v0  ;;  %v2051_v46 = vld [vmem:[#allocation11 + $0x18] sm:$0xff] }
  0x47   :  { %682 = vmatpush.bf16.msrb.mxu2 %v2037_v14 }
  0x49   :  { %769 = vmatpush.bf16.msrb.mxu3 %v2046_v25  ;;  %v2077_v25 = vld [vmem:[#allocation11 + $0x28] sm:$0xff] }
  0x4a   :  { %521 = vmatpush.bf16.msrb.mxu0 %v2020_v47  ;;  %599 = vmatpush.bf16.msrb.mxu1 %v2028_v1  ;;  %v2050_v47 = vld [vmem:[#allocation11 + $0x10] sm:$0xff] }
  0x4b   :  { %683 = vmatpush.bf16.msrb.mxu2 %v2036_v15 }
  0x4d   :  { %770 = vmatpush.bf16.msrb.mxu3 %v2045_v26  ;;  %v2076_v26 = vld [vmem:[#allocation11 + $0x20] sm:$0xff] }
  0x4e   :  { %522 = vmatpush.bf16.msrb.mxu0 %v2019_v58  ;;  %600 = vmatpush.bf16.msrb.mxu1 %v2027_v2  ;;  %v2063_v58 = vld [vmem:[#allocation13 + $0x38] sm:$0xff] }
  0x4f   :  { %684 = vmatpush.bf16.msrb.mxu2 %v2035_v16 }
  0x51   :  { %771 = vmatpush.bf16.msrb.mxu3 %v2044_v27  ;;  %v2075_v27 = vld [vmem:[#allocation11 + $0x18] sm:$0xff] }
  0x52   :  { %523 = vmatpush.bf16.msrb.mxu0 %v2018_v59  ;;  %601 = vmatpush.bf16.msrb.mxu1 %v2026_v3  ;;  %v2062_v59 = vld [vmem:[#allocation13 + $0x30] sm:$0xff] }
  0x53   :  { %685 = vmatpush.bf16.msrb.mxu2 %v2034_v21  ;;  %v2058_v3 = vld [vmem:[#allocation13 + $0x10] sm:$0xff]  ;;  %v2065_v21 = vld [vmem:[#allocation10 + $0x8] sm:$0xff] }
  0x56   :  { %524 = vmatpush.bf16.msrb.mxu0 %v2017_v60  ;;  %602 = vmatpush.bf16.msrb.mxu1 %v2025_v4  ;;  %v2061_v60 = vld [vmem:[#allocation13 + $0x28] sm:$0xff] }
  0x57   :  { %686 = vmatpush.bf16.msrb.mxu2 %v2033_v22  ;;  %v2057_v4 = vld [vmem:[#allocation13 + $0x8] sm:$0xff]  ;;  %v2064_v22 = vld [vmem:[#allocation10] sm:$0xff] }
  0x5a   :  { %525 = vmatpush.bf16.msrb.mxu0 %v2016_v61  ;;  %603 = vmatpush.bf16.msrb.mxu1 %v2024_v11  ;;  %v2060_v61 = vld [vmem:[#allocation13 + $0x20] sm:$0xff] }
  0x5b   :  { %687 = vmatpush.bf16.msrb.mxu2 %v2032_v23  ;;  %v2079_v23 = vld [vmem:[#allocation11 + $0x38] sm:$0xff] }
  0x5e   :  { %846 = vmatpush.bf16.msra.mxu0 %v2055_v42  ;;  %930 = vmatpush.bf16.msra.mxu1 %v2063_v58  ;;  %v2084_v42 = vld [vmem:[#allocation13 + $0x20] sm:$0xff] }
  0x62   :  { %847 = vmatpush.bf16.msra.mxu0 %v2054_v43  ;;  %931 = vmatpush.bf16.msra.mxu1 %v2062_v59  ;;  %v2083_v43 = vld [vmem:[#allocation13 + $0x18] sm:$0xff] }
  0x66   :  { %848 = vmatpush.bf16.msra.mxu0 %v2053_v44  ;;  %932 = vmatpush.bf16.msra.mxu1 %v2061_v60 }
  0x6a   :  { %849 = vmatpush.bf16.msra.mxu0 %v2052_v45  ;;  %933 = vmatpush.bf16.msra.mxu1 %v2060_v61 }
  0x6e   :  { %850 = vmatpush.bf16.msra.mxu0 %v2051_v46  ;;  %934 = vmatpush.bf16.msra.mxu1 %v2059_v62 }
  0x72   :  { %851 = vmatpush.bf16.msra.mxu0 %v2050_v47  ;;  %935 = vmatpush.bf16.msra.mxu1 %v2058_v3  ;;  %v2089_v3 = vld [vmem:[#allocation10 + $0x8] sm:$0xff] }
  0x76   :  { %936 = vmatpush.bf16.msra.mxu1 %v2057_v4  ;;  %v2088_v4 = vld [vmem:[#allocation10] sm:$0xff] }
  0xb9   :  { %v2367_v35 = vpop.f32.mrf.mxu0 }
  0xba   :  { %v276_v36 = vpop.f32.mrf.mxu1 }
  0xbb   :  { %v277_v37 = vadd.f32 %v276_v36, %v2367_v35 }
  0xbd   :  { %v280_v38 = vpack.c.bf16 %v277_v37, %v277_v37 }
  0xbf   :  { %353 = vmatmul.bf16.vlgmr.msra.gmra.mxu2 %v280_v38  ;;  %v2043_v38 = vld [vmem:[#allocation10 + $0x18] sm:$0xff] }
  0xc0   :  { %772 = vmatpush.bf16.msrb.mxu3 %v2043_v38  ;;  %v2072_v38 = vld [vmem:[#allocation11] sm:$0xff] }
  0xc1   :  { %v191_v39 = vpop.f32.mrf.mxu0 }
  0xc2   :  { %v278_v40 = vpop.f32.mrf.mxu1  ;;  %v2042_v39 = vld [vmem:[#allocation10 + $0x10] sm:$0xff] }
  0xc3   :  { %v2041_v40 = vld [vmem:[#allocation10 + $0x8] sm:$0xff] }
  0xc4   :  { %773 = vmatpush.bf16.msrb.mxu3 %v2042_v39  ;;  %v2087_v39 = vld [vmem:[#allocation13 + $0x38] sm:$0xff] }
  0xc8   :  { %774 = vmatpush.bf16.msrb.mxu3 %v2041_v40  ;;  %v2086_v40 = vld [vmem:[#allocation13 + $0x30] sm:$0xff] }
  0xcc   :  { %775 = vmatpush.bf16.msrb.mxu3 %v2040_v41  ;;  %v2085_v41 = vld [vmem:[#allocation13 + $0x28] sm:$0xff] }
 0x142   :  { %v354_v49 = vpop.f32.mrf.mxu2 }
 0x143   :  { %v359_v50 = vsub.f32 %v354_v49, %v2370_v48  ;;  %v361_v51 = vsub.f32 0.0, %v354_v49  ;;  %v2049_v49 = vld [vmem:[#allocation11 + $0x8] sm:$0xff] }
 0x144   :  { %852 = vmatpush.bf16.msra.mxu0 %v2049_v49  ;;  %v2082_v49 = vld [vmem:[#allocation13 + $0x10] sm:$0xff] }
 0x145   :  { %v362_v52 = vsub.f32 %v361_v51, %v2370_v48  ;;  %v360_v53 = vmax.f32 %v359_v50, 0.0  ;;  %v699_v51 = vstv %s1693_s25 }
 0x147   :  { %v363_v54 = vmax.f32 %v362_v52, 0.0 }
 0x149   :  { %v364_v55 = vsub.f32 %v360_v53, %v363_v54 }
 0x14a   :  { %v356_v56 = vpop.f32.mrf.mxu2 }
 0x14b   :  { %v365_v57 = vpack.c.bf16 %v364_v55, %v364_v55 }
 0x14d   :  { %438 = vmatmul.bf16.vlgmr.msra.gmra.mxu3 %v365_v57  ;;  %v2048_v57 = vld [vmem:[#allocation11] sm:$0xff] }
 0x14e   :  { %853 = vmatpush.bf16.msra.mxu0 %v2048_v57  ;;  %1096 = vmatpush.bf16.msra.mxu3 %v2079_v23  ;;  %v2108_v23 = vld [vmem:[#allocation13 + $0x20] sm:$0xff] }
 0x152   :  { %1097 = vmatpush.bf16.msra.mxu3 %v2078_v24  ;;  %v2107_v24 = vld [vmem:[#allocation13 + $0x18] sm:$0xff] }
 0x156   :  { %1098 = vmatpush.bf16.msra.mxu3 %v2077_v25 }
 0x15a   :  { %1099 = vmatpush.bf16.msra.mxu3 %v2076_v26 }
 0x15e   :  { %1100 = vmatpush.bf16.msra.mxu3 %v2075_v27 }
 0x1d0   :  { %v2374_v5 = vpop.f32.mrf.mxu3 }
 0x1d1   :  { %444 = vst [vmem:[#allocation14 + $0x8] sm:$0xff] %v2374_v5  ;;  %v450_v7 = vmul.f32 %v449_v6, %v2374_v5  ;;  %v2071_v6 = vld [vmem:[#allocation10 + $0x38] sm:$0xff] }
 0x1d2   :  { %1018 = vmatpush.bf16.msra.mxu2 %v2071_v6  ;;  %v2102_v6 = vld [vmem:[#allocation11 + $0x30] sm:$0xff] }
 0x1d3   :  { %v451_v8 = vadd.f32 %v450_v7, %v2374_v5  ;;  %v2070_v7 = vld [vmem:[#allocation10 + $0x30] sm:$0xff] }
 0x1d5   :  { %v452_v9 = vpack.c.bf16 %v451_v8, %v451_v8  ;;  %v2069_v8 = vld [vmem:[#allocation10 + $0x28] sm:$0xff] }
 0x1d6   :  { %1019 = vmatpush.bf16.msra.mxu2 %v2070_v7  ;;  %v2101_v7 = vld [vmem:[#allocation11 + $0x28] sm:$0xff] }
 0x1d7   :  { %526 = vmatmul.bf16.vlgmr.msrb.gmra.mxu0 %v452_v9  ;;  %v2068_v9 = vld [vmem:[#allocation10 + $0x20] sm:$0xff] }
 0x1d8   :  { %v441_v10 = vpop.f32.mrf.mxu3  ;;  %1180 = vmatpush.bf16.msrb.mxu0 %v2087_v39 }
 0x1da   :  { %1020 = vmatpush.bf16.msra.mxu2 %v2069_v8  ;;  %v2100_v8 = vld [vmem:[#allocation11 + $0x20] sm:$0xff] }
 0x1dc   :  { %1181 = vmatpush.bf16.msrb.mxu0 %v2086_v40 }
 0x1de   :  { %1021 = vmatpush.bf16.msra.mxu2 %v2068_v9  ;;  %v2099_v9 = vld [vmem:[#allocation11 + $0x18] sm:$0xff] }
 0x1e0   :  { %1182 = vmatpush.bf16.msrb.mxu0 %v2085_v41 }
 0x1e4   :  { %1183 = vmatpush.bf16.msrb.mxu0 %v2084_v42 }
 0x1e8   :  { %1184 = vmatpush.bf16.msrb.mxu0 %v2083_v43 }
 0x1ec   :  { %1185 = vmatpush.bf16.msrb.mxu0 %v2082_v49 }
 0x254   :  { %v527_v17 = vpop.f32.mrf.mxu0 }
 0x255   :  { %v528_v18 = vadd.f32 %v527_v17, %v2367_v35 }
 0x257   :  { %v531_v19 = vpack.c.bf16 %v528_v18, %v528_v18 }
 0x259   :  { %604 = vmatmul.bf16.vlgmr.msrb.gmra.mxu1 %v531_v19  ;;  %v2067_v19 = vld [vmem:[#allocation10 + $0x18] sm:$0xff] }
 0x25a   :  { %1022 = vmatpush.bf16.msra.mxu2 %v2067_v19  ;;  %v2096_v19 = vld [vmem:[#allocation11] sm:$0xff] }
 0x25c   :  { %v529_v20 = vpop.f32.mrf.mxu0 }
 0x25d   :  { %v2066_v20 = vld [vmem:[#allocation10 + $0x10] sm:$0xff] }
 0x25e   :  { %1023 = vmatpush.bf16.msra.mxu2 %v2066_v20  ;;  %v2111_v20 = vld [vmem:[#allocation13 + $0x38] sm:$0xff] }
 0x262   :  { %1024 = vmatpush.bf16.msra.mxu2 %v2065_v21  ;;  %v2110_v21 = vld [vmem:[#allocation13 + $0x30] sm:$0xff] }
 0x266   :  { %1025 = vmatpush.bf16.msra.mxu2 %v2064_v22  ;;  %v2109_v22 = vld [vmem:[#allocation13 + $0x28] sm:$0xff] }
 0x2d6   :  { %v605_v28 = vpop.f32.mrf.mxu1 }
 0x2d7   :  { %v609_v29 = vsub.f32 %v605_v28, %v2370_v48  ;;  %v611_v30 = vsub.f32 0.0, %v605_v28  ;;  %v2074_v28 = vld [vmem:[#allocation11 + $0x10] sm:$0xff] }
 0x2d8   :  { %1101 = vmatpush.bf16.msra.mxu3 %v2074_v28 }
 0x2d9   :  { %v612_v31 = vsub.f32 %v611_v30, %v2370_v48  ;;  %v610_v32 = vmax.f32 %v609_v29, 0.0  ;;  %v2073_v29 = vld [vmem:[#allocation11 + $0x8] sm:$0xff] }
 0x2db   :  { %v613_v33 = vmax.f32 %v612_v31, 0.0  ;;  %v949_v31 = vstv %s1790_s26 }
 0x2dc   :  { %1102 = vmatpush.bf16.msra.mxu3 %v2073_v29  ;;  %v2106_v29 = vld [vmem:[#allocation13 + $0x10] sm:$0xff] }
 0x2dd   :  { %v614_v34 = vsub.f32 %v610_v32, %v613_v33 }
 0x2de   :  { %v607_v36 = vpop.f32.mrf.mxu1 }
 0x2df   :  { %v615_v37 = vpack.c.bf16 %v614_v34, %v614_v34 }
 0x2e0   :  { %1103 = vmatpush.bf16.msra.mxu3 %v2072_v38 }
 0x2e1   :  { %688 = vmatmul.bf16.vlgmr.msrb.gmra.mxu2 %v615_v37 }
 0x364   :  { %v2382_v50 = vpop.f32.mrf.mxu2 }
 0x365   :  { %694 = vst [vmem:[#allocation14 + $0x10] sm:$0xff] %v2382_v50  ;;  %v698_v52 = vsub.f32 %v2382_v50, %v2374_v5  ;;  %v2056_v5 = vld [vmem:[#allocation13] sm:$0xff] }
 0x366   :  { %937 = vmatpush.bf16.msra.mxu1 %v2056_v5  ;;  %v2103_v5 = vld [vmem:[#allocation11 + $0x38] sm:$0xff] }
 0x367   :  { %v700_v53 = vmul.f32 %v699_v51, %v698_v52  ;;  %v2080_v51 = vld [vmem:[#allocation13] sm:$0xff]  ;;  %v2095_v52 = vld [vmem:[#allocation10 + $0x38] sm:$0xff]  ;;  %1346 = vmatpush.bf16.msrb.mxu2 %v2103_v5 }
 0x369   :  { %v701_v54 = vadd.f32 %v700_v53, %v2382_v50  ;;  %v2094_v53 = vld [vmem:[#allocation10 + $0x30] sm:$0xff] }
 0x36a   :  { %1268 = vmatpush.bf16.msrb.mxu1 %v2095_v52 }
 0x36b   :  { %v702_v55 = vpack.c.bf16 %v701_v54, %v701_v54  ;;  %v2093_v54 = vld [vmem:[#allocation10 + $0x28] sm:$0xff]  ;;  %1347 = vmatpush.bf16.msrb.mxu2 %v2102_v6 }
 0x36c   :  { %v691_v56 = vpop.f32.mrf.mxu2 }
 0x36d   :  { %776 = vmatmul.bf16.vlgmr.msrb.gmra.mxu3 %v702_v55  ;;  %v2092_v55 = vld [vmem:[#allocation10 + $0x20] sm:$0xff] }
 0x36e   :  { %1269 = vmatpush.bf16.msrb.mxu1 %v2094_v53  ;;  %1430 = vmatpush.bf16.msrb.mxu3 %v2111_v20 }
 0x36f   :  { %1348 = vmatpush.bf16.msrb.mxu2 %v2101_v7 }
 0x372   :  { %1270 = vmatpush.bf16.msrb.mxu1 %v2093_v54  ;;  %1431 = vmatpush.bf16.msrb.mxu3 %v2110_v21 }
 0x373   :  { %1349 = vmatpush.bf16.msrb.mxu2 %v2100_v8 }
 0x376   :  { %1271 = vmatpush.bf16.msrb.mxu1 %v2092_v55  ;;  %1432 = vmatpush.bf16.msrb.mxu3 %v2109_v22 }
 0x377   :  { %1350 = vmatpush.bf16.msrb.mxu2 %v2099_v9 }
 0x37a   :  { %1433 = vmatpush.bf16.msrb.mxu3 %v2108_v23 }
 0x37e   :  { %1434 = vmatpush.bf16.msrb.mxu3 %v2107_v24 }
 0x382   :  { %1435 = vmatpush.bf16.msrb.mxu3 %v2106_v29 }
 0x3f0   :  { %v777_v63 = vpop.f32.mrf.mxu3 }
 0x3f1   :  { %v778_v0 = vadd.f32 %v777_v63, %v2367_v35 }
 0x3f3   :  { %v781_v1 = vpack.c.bf16 %v778_v0, %v778_v0 }
 0x3f5   :  { %854 = vmatmul.bf16.vlgmr.msra.gmra.mxu0 %v781_v1  ;;  %v2091_v1 = vld [vmem:[#allocation10 + $0x18] sm:$0xff] }
 0x3f6   :  { %1272 = vmatpush.bf16.msrb.mxu1 %v2091_v1 }
 0x3f8   :  { %v779_v2 = vpop.f32.mrf.mxu3 }
 0x3f9   :  { %v2090_v2 = vld [vmem:[#allocation10 + $0x10] sm:$0xff] }
 0x3fa   :  { %1273 = vmatpush.bf16.msrb.mxu1 %v2090_v2 }
 0x3fe   :  { %1274 = vmatpush.bf16.msrb.mxu1 %v2089_v3 }
 0x402   :  { %1275 = vmatpush.bf16.msrb.mxu1 %v2088_v4 }
 0x472   :  { %v855_v10 = vpop.f32.mrf.mxu0 }
 0x473   :  { %v859_v11 = vsub.f32 %v855_v10, %v2370_v48  ;;  %v861_v12 = vsub.f32 0.0, %v855_v10  ;;  %v2098_v10 = vld [vmem:[#allocation11 + $0x10] sm:$0xff] }
 0x474   :  { %1351 = vmatpush.bf16.msrb.mxu2 %v2098_v10 }
 0x475   :  { %v862_v13 = vsub.f32 %v861_v12, %v2370_v48  ;;  %v860_v14 = vmax.f32 %v859_v11, 0.0  ;;  %v2097_v11 = vld [vmem:[#allocation11 + $0x8] sm:$0xff] }
 0x477   :  { %v863_v15 = vmax.f32 %v862_v13, 0.0  ;;  %v1199_v13 = vstv %s1887_s27 }
 0x478   :  { %1352 = vmatpush.bf16.msrb.mxu2 %v2097_v11 }
 0x479   :  { %v864_v16 = vsub.f32 %v860_v14, %v863_v15 }
 0x47a   :  { %v857_v17 = vpop.f32.mrf.mxu0 }
 0x47b   :  { %v865_v18 = vpack.c.bf16 %v864_v16, %v864_v16 }
 0x47c   :  { %1353 = vmatpush.bf16.msrb.mxu2 %v2096_v19 }
 0x47d   :  { %938 = vmatmul.bf16.vlgmr.msra.gmra.mxu1 %v865_v18 }
 0x4fa   :  { %v2391_v30 = vpop.f32.mrf.mxu1 }
 0x4fb   :  { %944 = vst [vmem:[#allocation14 + $0x18] sm:$0xff] %v2391_v30  ;;  %v948_v32 = vsub.f32 %v2391_v30, %v2382_v50  ;;  %v2081_v50 = vld [vmem:[#allocation13 + $0x8] sm:$0xff] }
 0x4fc   :  { %1186 = vmatpush.bf16.msrb.mxu0 %v2081_v50 }
 0x4fd   :  { %v950_v33 = vmul.f32 %v949_v31, %v948_v32  ;;  %v2104_v31 = vld [vmem:[#allocation13] sm:$0xff] }
 0x4ff   :  { %v951_v34 = vadd.f32 %v950_v33, %v2391_v30 }
 0x500   :  { %1187 = vmatpush.bf16.msrb.mxu0 %v2080_v51 }
 0x501   :  { %v952_v36 = vpack.c.bf16 %v951_v34, %v951_v34 }
 0x502   :  { %v941_v37 = vpop.f32.mrf.mxu1 }
 0x503   :  { %1026 = vmatmul.bf16.vlgmr.msra.gmra.mxu2 %v952_v36 }
 0x586   :  { %v1027_v44 = vpop.f32.mrf.mxu2 }
 0x587   :  { %v1028_v45 = vadd.f32 %v1027_v44, %v2367_v35 }
 0x589   :  { %v1031_v46 = vpack.c.bf16 %v1028_v45, %v1028_v45 }
 0x58b   :  { %1104 = vmatmul.bf16.vlgmr.msra.gmra.mxu3 %v1031_v46 }
 0x58e   :  { %v1029_v47 = vpop.f32.mrf.mxu2 }
 0x60e   :  { %v1105_v56 = vpop.f32.mrf.mxu3 }
 0x60f   :  { %v1109_v57 = vsub.f32 %v1105_v56, %v2370_v48  ;;  %v1111_v58 = vsub.f32 0.0, %v1105_v56 }
 0x611   :  { %v1112_v59 = vsub.f32 %v1111_v58, %v2370_v48  ;;  %v1110_v60 = vmax.f32 %v1109_v57, 0.0 }
 0x613   :  { %v1113_v61 = vmax.f32 %v1112_v59, 0.0 }
 0x615   :  { %v1114_v62 = vsub.f32 %v1110_v60, %v1113_v61 }
 0x616   :  { %v1107_v63 = vpop.f32.mrf.mxu3 }
 0x617   :  { %v1115_v0 = vpack.c.bf16 %v1114_v62, %v1114_v62 }
 0x619   :  { %1188 = vmatmul.bf16.vlgmr.msrb.gmra.mxu0 %v1115_v0 }
 0x696   :  { %v1189_v12 = vpop.f32.mrf.mxu0 }
 0x697   :  { %1194 = vst [vmem:[#allocation14 + $0x20] sm:$0xff] %v1189_v12  ;;  %v1198_v14 = vsub.f32 %v1189_v12, %v2391_v30  ;;  %v2105_v30 = vld [vmem:[#allocation13 + $0x8] sm:$0xff] }
 0x698   :  { %1436 = vmatpush.bf16.msrb.mxu3 %v2105_v30 }
 0x699   :  { %v1200_v15 = vmul.f32 %v1199_v13, %v1198_v14 }
 0x69b   :  { %v1201_v16 = vadd.f32 %v1200_v15, %v1189_v12 }
 0x69c   :  { %1437 = vmatpush.bf16.msrb.mxu3 %v2104_v31 }
 0x69d   :  { %v1202_v17 = vpack.c.bf16 %v1201_v16, %v1201_v16 }
 0x69e   :  { %v1191_v18 = vpop.f32.mrf.mxu0 }
 0x69f   :  { %1276 = vmatmul.bf16.vlgmr.msrb.gmra.mxu1 %v1202_v17 }
 0x71c   :  { %v1277_v25 = vpop.f32.mrf.mxu1 }
 0x71d   :  { %v1278_v26 = vadd.f32 %v1277_v25, %v2367_v35 }
 0x71f   :  { %v1281_v27 = vpack.c.bf16 %v1278_v26, %v1278_v26 }
 0x721   :  { %1354 = vmatmul.bf16.vlgmr.msrb.gmra.mxu2 %v1281_v27 }
 0x724   :  { %v1279_v28 = vpop.f32.mrf.mxu1 }
 0x7a4   :  { %v1355_v32 = vpop.f32.mrf.mxu2 }
 0x7a5   :  { %v1359_v33 = vsub.f32 %v1355_v32, %v2370_v48  ;;  %v1361_v34 = vsub.f32 0.0, %v1355_v32 }
 0x7a7   :  { %v1362_v36 = vsub.f32 %v1361_v34, %v2370_v48  ;;  %v1360_v37 = vmax.f32 %v1359_v33, 0.0 }
 0x7a9   :  { %v1363_v38 = vmax.f32 %v1362_v36, 0.0 }
 0x7ab   :  { %v1364_v39 = vsub.f32 %v1360_v37, %v1363_v38 }
 0x7ac   :  { %v1357_v40 = vpop.f32.mrf.mxu2 }
 0x7ad   :  { %v1365_v35 = vpack.c.bf16 %v1364_v39, %v1364_v39 }
 0x7af   :  { %1438 = vmatmul.bf16.vlgmr.msrb.gmra.mxu3 %v1365_v35 }
 0x832   :  { %v1439_v41 = vpop.f32.mrf.mxu3 }
 0x833   :  { %1444 = vst [vmem:[#allocation14 + $0x28] sm:$0xff] %v1439_v41 }
 0x834   :  { %1457 = dma.vmem_to_hbm [thread:$0]  %s1450_s29, 768, %s1452_s8, [#allocation5], %s2300_s9, %s2300_s9, %s2301_s2  }
 0x83a   :  { %v1441_v48 = vpop.f32.mrf.mxu3 }
 0x83b   :  { %2288 = dma.done.wait [#allocation5], 768  }
 0x83c   :  { %2289 = vsyncadd [#allocation5], 4294966528 }
 0x83d   :  { %1462 = vsyncpa [#allocation4], 1 }
 0x83e   :  { %1463 = vsyncpa [#allocation9], 1 }
 0x83f   :  { %1464 = vsyncpa [#allocation12], 1 }
 0x840   :  { %1465 = vsyncpa [#allocation5], 1 }
 0x841   :  { %1466 = vsyncpa [#allocation6], 1 }

</bundles_post_ra>
